<compile_context>
chip_gen: v5e
topology: v5e:2x2
jax: 0.10.0
libtpu: 0.0.40
codegen_flags: <defaults>
</compile_context>

<pallas_src>
import functools

import jax
import jax.numpy as jnp
from jax.experimental import pallas as pl
from jax.experimental.pallas import tpu as pltpu


def _round_up(n: int, m: int) -> int:
    return ((n + m - 1) // m) * m


def dqn_kernel(x_ref, w1_ref, b1_ref, w2_ref, b2_ref, out_ref):
    """One batch-tile of the DQN forward: Linear -> ReLU -> Linear."""
    # Layer 1: (tb, obs) @ (obs, hid_p) -> f32 accumulate; bias + ReLU in f32.
    h = jnp.dot(x_ref[...], w1_ref[...], preferred_element_type=jnp.float32)
    h = jnp.maximum(h + b1_ref[...], 0.0)
    # Layer 2: (tb, hid_p) @ (hid_p, act_p) -> lane-dense store.
    h = h.astype(w2_ref.dtype)          # no-op for f32; keeps MXU native for bf16
    y = jnp.dot(h, w2_ref[...], preferred_element_type=jnp.float32) + b2_ref[...]
    out_ref[...] = y.astype(out_ref.dtype)


def prepare_dqn_params(w1, b1, w2, b2, *, compute_dtype=jnp.float32):
    """Pad/cast parameters ONCE (at init / after each optimizer step).

    w1: (obs, hidden), b1: (hidden,), w2: (hidden, act), b2: (act,).
    hidden/action dims are zero-padded to multiples of 128 (exact: padded
    hidden units get bias 0 -> relu(0)=0 -> multiply zero W2 rows; padded
    action columns are sliced off in dqn_forward).  obs is NOT padded.
    Biases stay f32 regardless of compute_dtype.
    """
    obs, hidden = w1.shape
    act = w2.shape[1]
    hid_p = _round_up(hidden, 128)
    act_p = _round_up(act, 128)
    w1_p = jnp.pad(w1.astype(compute_dtype), ((0, 0), (0, hid_p - hidden)))
    b1_p = jnp.pad(jnp.reshape(b1, (1, hidden)).astype(jnp.float32),
                   ((0, 0), (0, hid_p - hidden)))
    w2_p = jnp.pad(w2.astype(compute_dtype),
                   ((0, hid_p - hidden), (0, act_p - act)))
    b2_p = jnp.pad(jnp.reshape(b2, (1, act)).astype(jnp.float32),
                   ((0, 0), (0, act_p - act)))
    return w1_p, b1_p, w2_p, b2_p


@functools.partial(jax.jit,
                   static_argnames=("action_size", "batch_tile", "out_dtype"))
def dqn_forward(x, w1_p, b1_p, w2_p, b2_p, *, action_size,
                batch_tile=None, out_dtype=jnp.float32):
    """DQN forward.  x: (B, obs); padded params from prepare_dqn_params().
    Returns (B, action_size) in out_dtype (default float32)."""
    compute_dtype = w1_p.dtype
    B, obs = x.shape
    hid_p = w1_p.shape[1]
    act_p = w2_p.shape[1]

    x = x.astype(compute_dtype)        # torch: x.float() (or bf16 fast path)

    # Sublane multiple: 8 for f32 tiles, 16 for bf16 sublane packing.
    mult = 16 if compute_dtype == jnp.bfloat16 else 8
    if batch_tile is None:
        if B <= 256:
            batch_tile = _round_up(B, mult)            # single grid step
        else:
            # >= 2 "parallel" grid steps so both v7x TensorCores get work;
            # cap at 512 rows (near HBM roofline, tiny VMEM footprint).
            batch_tile = min(512, _round_up((B + 1) // 2, mult))
    batch_tile = _round_up(batch_tile, mult)
    B_p = _round_up(B, batch_tile)

    x_p = jnp.pad(x, ((0, B_p - B), (0, 0)))           # pad batch rows only

    out_padded = pl.pallas_call(
        dqn_kernel,
        out_shape=jax.ShapeDtypeStruct((B_p, act_p), out_dtype),
        grid_spec=pltpu.PrefetchScalarGridSpec(
            num_scalar_prefetch=0,
            grid=(B_p // batch_tile,),
            in_specs=[
                pl.BlockSpec((batch_tile, obs), lambda i: (i, 0)),  # x tile
                pl.BlockSpec((obs, hid_p), lambda i: (0, 0)),       # W1 (resident)
                pl.BlockSpec((1, hid_p), lambda i: (0, 0)),         # b1 (resident)
                pl.BlockSpec((hid_p, act_p), lambda i: (0, 0)),     # W2 (resident)
                pl.BlockSpec((1, act_p), lambda i: (0, 0)),         # b2 (resident)
            ],
            out_specs=pl.BlockSpec((batch_tile, act_p), lambda i: (i, 0)),
        ),
        compiler_params=pltpu.CompilerParams(
            dimension_semantics=("parallel",),   # megacore-shard big batches
        ),
    )(x_p, w1_p, b1_p, w2_p, b2_p)

    # TODO(synk): for large training batches, fuse the downstream argmax /
    # Q-value gather into the kernel to avoid the padded (tb,128) writeback.
    return out_padded[:B, :action_size]


def init_dqn_params(key, obs_size, action_size, hidden_size=128):
    """Deterministic init mimicking PyTorch nn.Linear default (U[-1/sqrt(fan_in), +])."""
    k1, k2, k3, k4 = jax.random.split(key, 4)
    bound1 = 1.0 / jnp.sqrt(obs_size)
    bound2 = 1.0 / jnp.sqrt(hidden_size)
    w1 = jax.random.uniform(k1, (obs_size, hidden_size), jnp.float32, -bound1, bound1)
    b1 = jax.random.uniform(k2, (hidden_size,), jnp.float32, -bound1, bound1)
    w2 = jax.random.uniform(k3, (hidden_size, action_size), jnp.float32, -bound2, bound2)
    b2 = jax.random.uniform(k4, (action_size,), jnp.float32, -bound2, bound2)
    return w1, b1, w2, b2


if __name__ == "__main__":
    key = jax.random.PRNGKey(0)
    k_x, k_x2, k_x3, k_p = jax.random.split(key, 4)

    batch, obs_size, action_size, hidden_size = 16, 32, 4, 128
    x = jax.random.normal(k_x, (batch, obs_size), jnp.float32)
    w1, b1, w2, b2 = init_dqn_params(k_p, obs_size, action_size, hidden_size)

    def ref_fwd(xx):
        return jnp.maximum(xx @ w1 + b1[None, :], 0.0) @ w2 + b2[None, :]

    # --- exact f32 path (matches torch float32 semantics) -------------------
    params_f32 = prepare_dqn_params(w1, b1, w2, b2, compute_dtype=jnp.float32)
    out = jax.block_until_ready(
        dqn_forward(x, *params_f32, action_size=action_size))
    assert out.shape == (batch, action_size)
    assert jnp.allclose(out, ref_fwd(x), atol=1e-5, rtol=1e-5)

    # Ragged replay-sample batch (padded to the tile internally).
    x2 = jax.random.normal(k_x2, (13, obs_size), jnp.float32)
    out2 = jax.block_until_ready(
        dqn_forward(x2, *params_f32, action_size=action_size))
    assert out2.shape == (13, action_size)
    assert jnp.allclose(out2, ref_fwd(x2), atol=1e-5, rtol=1e-5)

    # Training-sized batch: multi-step "parallel" grid (2 x 256 rows).
    x3 = jax.random.normal(k_x3, (512, obs_size), jnp.float32)
    out3 = jax.block_until_ready(
        dqn_forward(x3, *params_f32, action_size=action_size))
    assert out3.shape == (512, action_size)
    assert jnp.allclose(out3, ref_fwd(x3), atol=1e-4, rtol=1e-4)

    # --- bf16 MXU fast path (perf-review recommendation; looser tolerance) --
    params_bf16 = prepare_dqn_params(w1, b1, w2, b2, compute_dtype=jnp.bfloat16)
    out_bf = jax.block_until_ready(
        dqn_forward(x, *params_bf16, action_size=action_size))
    assert out_bf.shape == (batch, action_size)
    assert jnp.allclose(out_bf, ref_fwd(x), atol=5e-2, rtol=5e-2)

    print("KERNEL_OK")
</pallas_src>

<mosaic_0001>
module attributes {stable_mosaic.version = 11 : i64} {
  func.func @dqn_kernel(%arg0: i32, %arg1: memref<16x32xf32, #tpu.memory_space<vmem>>, %arg2: memref<32x128xf32, #tpu.memory_space<vmem>>, %arg3: memref<1x128xf32, #tpu.memory_space<vmem>>, %arg4: memref<128x128xf32, #tpu.memory_space<vmem>>, %arg5: memref<1x128xf32, #tpu.memory_space<vmem>>, %arg6: memref<16x128xf32, #tpu.memory_space<vmem>>) attributes {dimension_semantics = [#tpu.dimension_semantics<parallel>], iteration_bounds = array<i64: 1>, scalar_prefetch = 0 : i64, scratch_operands = 0 : i64, tpu.core_type = #tpu.core_type<tc>, window_params = [{transform_indices = @transform_0, window_bounds = array<i64: 16, 32>}, {pipeline_mode = #tpu.pipeline_mode<synchronous>, transform_indices = @transform_1, window_bounds = array<i64: 32, 128>}, {pipeline_mode = #tpu.pipeline_mode<synchronous>, transform_indices = @transform_2, window_bounds = array<i64: 1, 128>}, {pipeline_mode = #tpu.pipeline_mode<synchronous>, transform_indices = @transform_3, window_bounds = array<i64: 128, 128>}, {pipeline_mode = #tpu.pipeline_mode<synchronous>, transform_indices = @transform_4, window_bounds = array<i64: 1, 128>}, {transform_indices = @transform_5, window_bounds = array<i64: 16, 128>}]} {
    %c0 = arith.constant 0 : index
    %c0_0 = arith.constant 0 : index
    %0 = vector.load %arg1[%c0, %c0_0] : memref<16x32xf32, #tpu.memory_space<vmem>>, vector<16x32xf32>
    %c0_1 = arith.constant 0 : index
    %c0_2 = arith.constant 0 : index
    %1 = vector.load %arg2[%c0_1, %c0_2] : memref<32x128xf32, #tpu.memory_space<vmem>>, vector<32x128xf32>
    %cst = arith.constant dense<0.000000e+00> : vector<16x128xf32>
    %2 = tpu.matmul %0, %1, %cst {dimension_numbers = #tpu.dot_dimension_numbers<[1], [0], [0], [1], [0, 0, 1, 1], [], []>} : vector<16x32xf32>, vector<32x128xf32>, vector<16x128xf32> -> vector<16x128xf32>
    %c0_3 = arith.constant 0 : index
    %c0_4 = arith.constant 0 : index
    %3 = vector.load %arg3[%c0_3, %c0_4] : memref<1x128xf32, #tpu.memory_space<vmem>>, vector<1x128xf32>
    %4 = vector.broadcast %3 : vector<1x128xf32> to vector<16x128xf32>
    %5 = arith.addf %2, %4 : vector<16x128xf32>
    %cst_5 = arith.constant 0.000000e+00 : f32
    %6 = vector.broadcast %cst_5 : f32 to vector<16x128xf32>
    %7 = arith.maximumf %5, %6 : vector<16x128xf32>
    %c0_6 = arith.constant 0 : index
    %c0_7 = arith.constant 0 : index
    %8 = vector.load %arg4[%c0_6, %c0_7] : memref<128x128xf32, #tpu.memory_space<vmem>>, vector<128x128xf32>
    %cst_8 = arith.constant dense<0.000000e+00> : vector<16x128xf32>
    %9 = tpu.matmul %7, %8, %cst_8 {dimension_numbers = #tpu.dot_dimension_numbers<[1], [0], [0], [1], [0, 0, 1, 1], [], []>} : vector<16x128xf32>, vector<128x128xf32>, vector<16x128xf32> -> vector<16x128xf32>
    %c0_9 = arith.constant 0 : index
    %c0_10 = arith.constant 0 : index
    %10 = vector.load %arg5[%c0_9, %c0_10] : memref<1x128xf32, #tpu.memory_space<vmem>>, vector<1x128xf32>
    %11 = vector.broadcast %10 : vector<1x128xf32> to vector<16x128xf32>
    %12 = arith.addf %9, %11 : vector<16x128xf32>
    %c0_11 = arith.constant 0 : index
    %c0_12 = arith.constant 0 : index
    %13 = vector.load %arg6[%c0_11, %c0_12] : memref<16x128xf32, #tpu.memory_space<vmem>>, vector<16x128xf32>
    tpu.vector_store %arg6[%c0_11, %c0_12], %12 {strides = array<i32>} : memref<16x128xf32, #tpu.memory_space<vmem>>, vector<16x128xf32>,
    return
  }
  func.func @transform_0(%arg0: i32) -> (i32, i32) {
    %c0_i32 = arith.constant 0 : i32
    %c0_i32_0 = arith.constant 0 : i32
    return %arg0, %c0_i32 : i32, i32
  }
  func.func @transform_1(%arg0: i32) -> (i32, i32) {
    %c0_i32 = arith.constant 0 : i32
    %c0_i32_0 = arith.constant 0 : i32
    %c0_i32_1 = arith.constant 0 : i32
    return %c0_i32, %c0_i32_0 : i32, i32
  }
  func.func @transform_2(%arg0: i32) -> (i32, i32) {
    %c0_i32 = arith.constant 0 : i32
    %c0_i32_0 = arith.constant 0 : i32
    %c0_i32_1 = arith.constant 0 : i32
    return %c0_i32, %c0_i32_0 : i32, i32
  }
  func.func @transform_3(%arg0: i32) -> (i32, i32) {
    %c0_i32 = arith.constant 0 : i32
    %c0_i32_0 = arith.constant 0 : i32
    %c0_i32_1 = arith.constant 0 : i32
    return %c0_i32, %c0_i32_0 : i32, i32
  }
  func.func @transform_4(%arg0: i32) -> (i32, i32) {
    %c0_i32 = arith.constant 0 : i32
    %c0_i32_0 = arith.constant 0 : i32
    %c0_i32_1 = arith.constant 0 : i32
    return %c0_i32, %c0_i32_0 : i32, i32
  }
  func.func @transform_5(%arg0: i32) -> (i32, i32) {
    %c0_i32 = arith.constant 0 : i32
    %c0_i32_0 = arith.constant 0 : i32
    return %arg0, %c0_i32 : i32, i32
  }
}

</mosaic_0001>

<bundles_post_ra>
// kernel: dqn_forward.1
= control target key start
LH: loop header
LB: loop body
LE: loop exit
PB: predicated region body
PF: predicated region fallthrough
CT: control target
= control target key end

     0   :  { %10 = vsyncpa [#allocation3], 0  ;;  %s319_s0 = inlined_call_operand.hbm [shape: f32[16,32], index: 0, kind: input, shape index: {}]   ;;  %s320_s1 = inlined_call_operand.hbm [shape: f32[32,128], index: 1, kind: input, shape index: {}]   ;;  %s321_s2 = inlined_call_operand.vmem [shape: f32[1,128], index: 2, kind: input, shape index: {}]   ;;  %s322_s3 = inlined_call_operand.hbm [shape: f32[128,128], index: 3, kind: input, shape index: {}]   ;;  %s323_s4 = inlined_call_operand.vmem [shape: f32[1,128], index: 4, kind: input, shape index: {}]   ;;  %s324_s5 = inlined_call_operand.vmem [shape: f32[16,128], index: 5, kind: output, shape index: {}]  }
   0x1   :  { %11 = vsyncpa [#allocation5], 0  ;;  %s29_s20 = sshll.u32 %s320_s1, 4  ;;  %s261_s21 = smov [#allocation4]   ;;  %s30_s20 = int_to_ptr.hbm [resolvable:$true] %s29_s20 }
   0x2   :  { %s31_s22 = sshll.u32 %s261_s21, 4  ;;  %s16_s25 = sshll.u32 %s319_s0, 4  ;;  %s32_s22 = int_to_ptr.vmem [resolvable:$true] %s31_s22  ;;  %s17_s25 = int_to_ptr.hbm [resolvable:$true] %s16_s25 }
   0x3   :  { %s262_s26 = smov 128   ;;  %s263_s27 = smov 8  }
   0x4   :  { %37 = dma.hbm_to_vmem [thread:$0]  %s30_s20, 512, %s32_s22, [#allocation5], %s262_s26, %s262_s26, %s263_s27  }
   0x5   :  { %s264_s28 = smov [#allocation2]   ;;  %s44_s7 = sshll.u32 %s322_s3, 4  ;;  %s45_s7 = int_to_ptr.hbm [resolvable:$true] %s44_s7 }
   0x6   :  { %s18_s29 = sshll.u32 %s264_s28, 4  ;;  %s265_s1 = smov [#allocation6]   ;;  %s19_s29 = int_to_ptr.vmem [resolvable:$true] %s18_s29 }
   0x7   :  { %24 = dma.hbm_to_vmem [thread:$0]  %s17_s25, 256, %s19_s29, [#allocation3], %s262_s26, %s262_s26, %s263_s27  }
   0x8   :  { %s46_s8 = sshll.u32 %s265_s1, 4  ;;  %s47_s8 = int_to_ptr.vmem [resolvable:$true] %s46_s8 }
   0x9   :  { %52 = dma.hbm_to_vmem [thread:$0]  %s45_s7, 2048, %s47_s8, [#allocation5], %s262_s26, %s262_s26, %s263_s27  }
   0xa   :  { %257 = dma.done.wait [#allocation3], 256  }
   0xb   :  { %258 = vsyncadd [#allocation3], 4294967040 }
   0xc   :  { %259 = dma.done.wait [#allocation5], 2560  }
   0xd   :  { %260 = vsyncadd [#allocation5], 4294964736  ;;  %v72_v0 = vld [vmem:[#allocation4 + $0x18] sm:$0xff]  ;;  %v71_v1 = vld [vmem:[#allocation4 + $0x10] sm:$0xff]  ;;  %vm77_vm0 = vcmask 261120  }
   0xe   :  { %96 = vmatpush.msra.mxu0 %v72_v0  ;;  %v70_v2 = vld [vmem:[#allocation4 + $0x8] sm:$0xff]  ;;  %v124_v3 = vld [vmem:[#allocation6 + $0x78] sm:$0xff]  ;;  %v123_v4 = vld [vmem:[#allocation6 + $0x70] sm:$0xff] }
   0xf   :  { %129 = vmatpush.msra.mxu1 %v124_v3  ;;  %v69_v5 = vld [vmem:[#allocation4] sm:$0xff]  ;;  %v122_v6 = vld [vmem:[#allocation6 + $0x68] sm:$0xff]  ;;  %162 = vmatpush.msra.mxu2 %v124_v3  ;;  %v67_v7 = vld [vmem:[#allocation2] sm:$0xff] }
  0x10   :  { %97 = vmatpush.msra.mxu0 %v71_v1  ;;  %v121_v8 = vld [vmem:[#allocation6 + $0x60] sm:$0xff]  ;;  %v120_v9 = vld [vmem:[#allocation6 + $0x58] sm:$0xff]  ;;  %v119_v10 = vld [vmem:[#allocation6 + $0x50] sm:$0xff] }
  0x11   :  { %130 = vmatpush.msra.mxu1 %v123_v4  ;;  %163 = vmatpush.msra.mxu2 %v123_v4  ;;  %v118_v11 = vld [vmem:[#allocation6 + $0x48] sm:$0xff]  ;;  %v68_v12 = vld [vmem:[#allocation2 + $0x8] sm:$0xff]  ;;  %v117_v13 = vld [vmem:[#allocation6 + $0x40] sm:$0xff] }
  0x12   :  { %98 = vmatpush.msra.mxu0 %v70_v2  ;;  %v116_v14 = vld [vmem:[#allocation6 + $0x38] sm:$0xff]  ;;  %v115_v15 = vld [vmem:[#allocation6 + $0x30] sm:$0xff]  ;;  %v114_v16 = vld [vmem:[#allocation6 + $0x28] sm:$0xff] }
  0x13   :  { %131 = vmatpush.msra.mxu1 %v122_v6  ;;  %164 = vmatpush.msra.mxu2 %v122_v6  ;;  %v113_v17 = vld [vmem:[#allocation6 + $0x20] sm:$0xff]  ;;  %v112_v18 = vld [vmem:[#allocation6 + $0x18] sm:$0xff]  ;;  %v111_v19 = vld [vmem:[#allocation6 + $0x10] sm:$0xff] }
  0x14   :  { %99 = vmatpush.msra.mxu0 %v69_v5  ;;  %v110_v20 = vld [vmem:[#allocation6 + $0x8] sm:$0xff]  ;;  %v109_v21 = vld [vmem:[#allocation6] sm:$0xff]  ;;  %v183_v22 = vld [vmem:[%s321_s2] ss:$0 sm:$0xff] }
  0x15   :  { %160 = vmatmul.msk.f32.vlgmr.msra.gmra.mxu0 %vm77_vm0, %v67_v7  ;;  %132 = vmatpush.msra.mxu1 %v121_v8  ;;  %v184_v29 = vld [vmem:[%s323_s4] ss:$0 sm:$0xff] }
  0x16   :  { %165 = vmatpush.msra.mxu2 %v121_v8 }
  0x17   :  { %133 = vmatpush.msra.mxu1 %v120_v9 }
  0x18   :  { %166 = vmatpush.msra.mxu2 %v120_v9 }
  0x19   :  { %134 = vmatpush.msra.mxu1 %v119_v10 }
  0x1a   :  { %167 = vmatpush.msra.mxu2 %v119_v10 }
  0x1b   :  { %135 = vmatpush.msra.mxu1 %v118_v11 }
  0x1c   :  { %168 = vmatpush.msra.mxu2 %v118_v11 }
  0x1d   :  { %161 = vmatmul.msk.f32.gmra.mxu0 %vm77_vm0, %v68_v12  ;;  %136 = vmatpush.msra.mxu1 %v117_v13 }
  0x1e   :  { %169 = vmatpush.msra.mxu2 %v117_v13 }
  0x1f   :  { %137 = vmatpush.msra.mxu1 %v116_v14 }
  0x20   :  { %170 = vmatpush.msra.mxu2 %v116_v14 }
  0x21   :  { %138 = vmatpush.msra.mxu1 %v115_v15 }
  0x22   :  { %171 = vmatpush.msra.mxu2 %v115_v15 }
  0x23   :  { %139 = vmatpush.msra.mxu1 %v114_v16 }
  0x24   :  { %172 = vmatpush.msra.mxu2 %v114_v16 }
  0x25   :  { %140 = vmatpush.msra.mxu1 %v113_v17 }
  0x26   :  { %173 = vmatpush.msra.mxu2 %v113_v17 }
  0x27   :  { %141 = vmatpush.msra.mxu1 %v112_v18 }
  0x28   :  { %174 = vmatpush.msra.mxu2 %v112_v18 }
  0x29   :  { %142 = vmatpush.msra.mxu1 %v111_v19 }
  0x2a   :  { %175 = vmatpush.msra.mxu2 %v111_v19 }
  0x2b   :  { %143 = vmatpush.msra.mxu1 %v110_v20 }
  0x2c   :  { %176 = vmatpush.msra.mxu2 %v110_v20 }
  0x2d   :  { %144 = vmatpush.msra.mxu1 %v109_v21 }
  0x2e   :  { %177 = vmatpush.msra.mxu2 %v109_v21 }
  0x92   :  { %v101_v23 = vpop.f32.mrf.mxu0 }
  0x93   :  { %v102_v24 = vadd.f32 %v183_v22, %v101_v23 }
  0x95   :  { %v107_v25 = vmax.f32 %v102_v24, 0.0 }
  0x97   :  { %145 = vmatmul.f32.vlgmr.msra.gmra.mxu1 %v107_v25 }
  0x9a   :  { %v104_v26 = vpop.f32.mrf.mxu0 }
  0x9b   :  { %v105_v27 = vadd.f32 %v183_v22, %v104_v26 }
  0x9d   :  { %v108_v28 = vmax.f32 %v105_v27, 0.0 }
  0x9f   :  { %148 = vmatmul.f32.vlgmr.msra.gmra.mxu2 %v108_v28 }
 0x114   :  { %v146_v30 = vpop.f32.mrf.mxu1 }
 0x115   :  { %v147_v31 = vadd.f32 %v184_v29, %v146_v30 }
 0x117   :  { %152 = vst [vmem:[%s324_s5] sm:$0xff] %v147_v31 }
 0x122   :  { %v149_v32 = vpop.f32.mrf.mxu2 }
 0x123   :  { %v150_v33 = vadd.f32 %v184_v29, %v149_v32 }
 0x125   :  { %153 = vst [vmem:[%s324_s5 + $0x8] sm:$0xff] %v150_v33 }
 0x126   :  { %158 = vsyncpa [#allocation3], 1 }
 0x127   :  { %159 = vsyncpa [#allocation5], 1 }

</bundles_post_ra>
